<compile_context>
chip_gen: v7x
topology: tpu7x:2x2x1
jax: 0.10.0
libtpu: 0.0.40
codegen_flags: <defaults>
</compile_context>

<pallas_src>
import jax
import jax.numpy as jnp
import numpy as np
from jax.experimental import pallas as pl
from jax.experimental.pallas import tpu as pltpu

EMB_DIM = 128
MAX_NORM = 1.0


def _round_up(x, m):
    return (x + m - 1) // m * m


def prepare_params(emb_table, linear_w, linear_b, max_norm=MAX_NORM):
    """One-time parameter prep: hoisted max_norm renorm, vocab padding, W transpose."""
    V, D = emb_table.shape
    assert D == EMB_DIM

    # nn.Embedding(max_norm=1): rows with ||row|| > max_norm get rescaled.
    # Renorming the whole table once is equivalent to renorming each gathered row.
    sq = jnp.sum(emb_table * emb_table, axis=-1, keepdims=True)
    scale = jnp.where(sq > max_norm * max_norm, max_norm * jax.lax.rsqrt(sq), 1.0)
    table = (emb_table * scale).astype(jnp.float32)

    v_pad = _round_up(V, 128)  # lane-dense vocab dimension
    if v_pad != V:
        table = jnp.pad(table, ((0, v_pad - V), (0, 0)))
        linear_w = jnp.pad(linear_w, ((0, v_pad - V), (0, 0)))
        linear_b = jnp.pad(linear_b, ((0, v_pad - V),))

    w_t = jnp.transpose(linear_w).astype(jnp.float32)    # (D, V_pad): kept pre-transposed
    b2 = linear_b.reshape(1, v_pad).astype(jnp.float32)  # (1, V_pad)
    return table, w_t, b2


def _make_kernel(tm, v_pad):
    def kernel(idx_ref, emb_ref, wT_ref, b_ref, out_ref, x_ref):
        # Gather the TM token embeddings once per token tile (vocab tile j == 0)
        # via a one-hot matmul on the MXU; cache them in VMEM scratch.
        @pl.when(pl.program_id(1) == 0)
        def _():
            idx = idx_ref[...]                                            # (TM, 1) int32
            vocab_iota = jax.lax.broadcasted_iota(jnp.int32, (tm, v_pad), 1)
            one_hot = (vocab_iota == idx).astype(jnp.float32)             # (TM, V_pad)
            x_ref[...] = jnp.dot(one_hot, emb_ref[...],
                                 preferred_element_type=jnp.float32)      # (TM, D)

        # Linear vocab tile: y = x @ W^T[:, j*TN:(j+1)*TN] + b[j*TN:(j+1)*TN]
        out_ref[...] = (
            jnp.dot(x_ref[...], wT_ref[...], preferred_element_type=jnp.float32)
            + b_ref[...]
        )

    return kernel


def move_skipgram_forward(inputs_, table, w_t, b2, vocab_size, *, tm=128, tn=512):
    """inputs_: (B, S) int32; table/w_t/b2 from prepare_params; returns (B, S, vocab_size)."""
    B, S = inputs_.shape
    v_pad, D = table.shape
    N = B * S

    tm = min(tm, _round_up(N, 8))                     # fill MXU rows, shrink for tiny inputs
    n_pad = _round_up(N, tm)
    # TN: largest of (requested, 512, 256, 128) that is lane-dense and divides V_pad.
    tn = next(t for t in (tn, 512, 256, 128) if t <= v_pad and v_pad % t == 0)

    idx = inputs_.reshape(N).astype(jnp.int32)
    if n_pad != N:
        idx = jnp.pad(idx, (0, n_pad - N))            # pad with token 0; rows sliced away below
    idx = idx.reshape(n_pad, 1)

    out = pl.pallas_call(
        _make_kernel(tm, v_pad),
        out_shape=jax.ShapeDtypeStruct((n_pad, v_pad), jnp.float32),
        grid_spec=pltpu.PrefetchScalarGridSpec(
            num_scalar_prefetch=0,
            grid=(n_pad // tm, v_pad // tn),
            in_specs=[
                pl.BlockSpec((tm, 1), lambda i, j: (i, 0)),      # token ids for this tile
                pl.BlockSpec((v_pad, D), lambda i, j: (0, 0)),   # renormed table (resident)
                pl.BlockSpec((D, tn), lambda i, j: (0, j)),      # W^T vocab tile
                pl.BlockSpec((1, tn), lambda i, j: (0, j)),      # bias vocab tile
            ],
            out_specs=pl.BlockSpec((tm, tn), lambda i, j: (i, j)),
            scratch_shapes=[pltpu.VMEM((tm, D), jnp.float32)],   # gathered embeddings
        ),
        compiler_params=pltpu.CompilerParams(
            dimension_semantics=("parallel", "arbitrary")),
    )(idx, table, w_t, b2)

    return out[:N, :vocab_size].reshape(B, S, vocab_size)


def _reference(inputs_, emb_table, linear_w, linear_b, max_norm=MAX_NORM):
    x = jnp.take(emb_table, inputs_, axis=0)                    # (B, S, 128)
    norm = jnp.sqrt(jnp.sum(x * x, axis=-1, keepdims=True))
    scale = jnp.where(norm > max_norm, max_norm / (norm + 1e-7), 1.0)
    x = x * scale
    return jnp.einsum("bsd,vd->bsv", x, linear_w) + linear_b


if __name__ == "__main__":
    key = jax.random.PRNGKey(0)
    k_emb, k_w, k_b, k_idx = jax.random.split(key, 4)

    vocab_size = 64
    B, S = 2, 8

    # Deterministic parameter init (shapes from the module's __init__).
    emb_table = jax.random.normal(k_emb, (vocab_size, EMB_DIM), dtype=jnp.float32)
    bound = 1.0 / np.sqrt(EMB_DIM)
    linear_w = jax.random.uniform(k_w, (vocab_size, EMB_DIM), jnp.float32, -bound, bound)
    linear_b = jax.random.uniform(k_b, (vocab_size,), jnp.float32, -bound, bound)

    inputs_ = jax.random.randint(k_idx, (B, S), 0, vocab_size, dtype=jnp.int32)

    table, w_t, b2 = prepare_params(emb_table, linear_w, linear_b)
    out = move_skipgram_forward(inputs_, table, w_t, b2, vocab_size)
    out = jax.block_until_ready(out)

    ref = _reference(inputs_, emb_table, linear_w, linear_b)
    np.testing.assert_allclose(np.asarray(out), np.asarray(ref), rtol=1e-5, atol=2e-5)

    print("KERNEL_OK")
</pallas_src>

<mosaic_0001>
module attributes {stable_mosaic.version = 11 : i64} {
  func.func @kernel(%arg0: i32, %arg1: i32, %arg2: memref<16x1xi32, #tpu.memory_space<vmem>>, %arg3: memref<128x128xf32, #tpu.memory_space<vmem>>, %arg4: memref<128x128xf32, #tpu.memory_space<vmem>>, %arg5: memref<1x128xf32, #tpu.memory_space<vmem>>, %arg6: memref<16x128xf32, #tpu.memory_space<vmem>>, %arg7: memref<16x128xf32, #tpu.memory_space<vmem>>) attributes {dimension_semantics = [#tpu.dimension_semantics<parallel>, #tpu.dimension_semantics<arbitrary>], iteration_bounds = array<i64: 1, 1>, scalar_prefetch = 0 : i64, scratch_operands = 1 : i64, tpu.core_type = #tpu.core_type<tc>, window_params = [{transform_indices = @transform_0, window_bounds = array<i64: 16, 1>}, {pipeline_mode = #tpu.pipeline_mode<synchronous>, transform_indices = @transform_1, window_bounds = array<i64: 128, 128>}, {transform_indices = @transform_2, window_bounds = array<i64: 128, 128>}, {transform_indices = @transform_3, window_bounds = array<i64: 1, 128>}, {transform_indices = @transform_4, window_bounds = array<i64: 16, 128>}]} {
    %c0_i32 = arith.constant 0 : i32
    %0 = arith.cmpi eq, %arg1, %c0_i32 : i32
    %1 = arith.extui %0 : i1 to i32
    %c0_i32_0 = arith.constant 0 : i32
    %2 = arith.cmpi ne, %1, %c0_i32_0 : i32
    scf.if %2 {
      %c0_8 = arith.constant 0 : index
      %c0_9 = arith.constant 0 : index
      %10 = vector.load %arg2[%c0_8, %c0_9] : memref<16x1xi32, #tpu.memory_space<vmem>>, vector<16x1xi32>
      %11 = tpu.iota {dimensions = array<i32: 1>} : vector<16x128xi32>
      %12 = vector.broadcast %10 : vector<16x1xi32> to vector<16x128xi32>
      %13 = arith.cmpi eq, %11, %12 : vector<16x128xi32>
      %14 = arith.extui %13 : vector<16x128xi1> to vector<16x128xi32>
      %15 = arith.sitofp %14 : vector<16x128xi32> to vector<16x128xf32>
      %c0_10 = arith.constant 0 : index
      %c0_11 = arith.constant 0 : index
      %16 = vector.load %arg3[%c0_10, %c0_11] : memref<128x128xf32, #tpu.memory_space<vmem>>, vector<128x128xf32>
      %cst_12 = arith.constant dense<0.000000e+00> : vector<16x128xf32>
      %17 = tpu.matmul %15, %16, %cst_12 {dimension_numbers = #tpu.dot_dimension_numbers<[1], [0], [0], [1], [0, 0, 1, 1], [], []>} : vector<16x128xf32>, vector<128x128xf32>, vector<16x128xf32> -> vector<16x128xf32>
      %c0_13 = arith.constant 0 : index
      %c0_14 = arith.constant 0 : index
      %18 = vector.load %arg7[%c0_13, %c0_14] : memref<16x128xf32, #tpu.memory_space<vmem>>, vector<16x128xf32>
      tpu.vector_store %arg7[%c0_13, %c0_14], %17 {strides = array<i32>} : memref<16x128xf32, #tpu.memory_space<vmem>>, vector<16x128xf32>,
    } else {
    }
    %c0 = arith.constant 0 : index
    %c0_1 = arith.constant 0 : index
    %3 = vector.load %arg7[%c0, %c0_1] : memref<16x128xf32, #tpu.memory_space<vmem>>, vector<16x128xf32>
    %c0_2 = arith.constant 0 : index
    %c0_3 = arith.constant 0 : index
    %4 = vector.load %arg4[%c0_2, %c0_3] : memref<128x128xf32, #tpu.memory_space<vmem>>, vector<128x128xf32>
    %cst = arith.constant dense<0.000000e+00> : vector<16x128xf32>
    %5 = tpu.matmul %3, %4, %cst {dimension_numbers = #tpu.dot_dimension_numbers<[1], [0], [0], [1], [0, 0, 1, 1], [], []>} : vector<16x128xf32>, vector<128x128xf32>, vector<16x128xf32> -> vector<16x128xf32>
    %c0_4 = arith.constant 0 : index
    %c0_5 = arith.constant 0 : index
    %6 = vector.load %arg5[%c0_4, %c0_5] : memref<1x128xf32, #tpu.memory_space<vmem>>, vector<1x128xf32>
    %7 = vector.broadcast %6 : vector<1x128xf32> to vector<16x128xf32>
    %8 = arith.addf %5, %7 : vector<16x128xf32>
    %c0_6 = arith.constant 0 : index
    %c0_7 = arith.constant 0 : index
    %9 = vector.load %arg6[%c0_6, %c0_7] : memref<16x128xf32, #tpu.memory_space<vmem>>, vector<16x128xf32>
    tpu.vector_store %arg6[%c0_6, %c0_7], %8 {strides = array<i32>} : memref<16x128xf32, #tpu.memory_space<vmem>>, vector<16x128xf32>,
    return
  }
  func.func @transform_0(%arg0: i32, %arg1: i32) -> (i32, i32) {
    %c0_i32 = arith.constant 0 : i32
    %c0_i32_0 = arith.constant 0 : i32
    return %arg0, %c0_i32 : i32, i32
  }
  func.func @transform_1(%arg0: i32, %arg1: i32) -> (i32, i32) {
    %c0_i32 = arith.constant 0 : i32
    %c0_i32_0 = arith.constant 0 : i32
    %c0_i32_1 = arith.constant 0 : i32
    return %c0_i32, %c0_i32_0 : i32, i32
  }
  func.func @transform_2(%arg0: i32, %arg1: i32) -> (i32, i32) {
    %c0_i32 = arith.constant 0 : i32
    %c0_i32_0 = arith.constant 0 : i32
    return %c0_i32, %arg1 : i32, i32
  }
  func.func @transform_3(%arg0: i32, %arg1: i32) -> (i32, i32) {
    %c0_i32 = arith.constant 0 : i32
    %c0_i32_0 = arith.constant 0 : i32
    return %c0_i32, %arg1 : i32, i32
  }
  func.func @transform_4(%arg0: i32, %arg1: i32) -> (i32, i32) {
    %c0_i32 = arith.constant 0 : i32
    return %arg0, %arg1 : i32, i32
  }
}

</mosaic_0001>

<bundles_post_ra>
// kernel: tpu_custom_call.1
= control target key start
LH: loop header
LB: loop body
LE: loop exit
PB: predicated region body
PF: predicated region fallthrough
CT: control target
= control target key end

     0   :  { %9 = vsyncpa [#allocation4], 0  ;;  %s620_s0 = inlined_call_operand.vmem [shape: s32[16,1], index: 0, kind: input, shape index: {}]   ;;  %s621_s1 = inlined_call_operand.hbm [shape: f32[128,128], index: 1, kind: input, shape index: {}]   ;;  %s622_s2 = inlined_call_operand.hbm [shape: f32[128,128], index: 2, kind: input, shape index: {}]   ;;  %s623_s3 = inlined_call_operand.vmem [shape: f32[1,128], index: 3, kind: input, shape index: {}]   ;;  %s624_s4 = inlined_call_operand.hbm [shape: f32[16,128], index: 4, kind: output, shape index: {}]  }
   0x1   :  { %10 = vsyncpa [#allocation7], 0 }
   0x2   :  { %11 = vsyncpa [#allocation5], 0  ;;  %s534_s15 = smov [#allocation3]   ;;  %s462_s19 = scalar_lea.hbm %s621_s1, 2048 }
   0x3   :  { %s19_s16 = sshll.u32 %s534_s15, 4  ;;  %p463_p0 = scmp.ne.s32.totalorder %s621_s1, %s462_s19  ;;  %s20_s16 = int_to_ptr.vmem [resolvable:$true] %s19_s16 }
   0x4   :  { %p466_p1 = scmp.lt.u32.totalorder %s462_s19, %s621_s1 }
   0x6   :  { %p468_p2 = pnand %p466_p1, %p463_p0 }
   0x8   :  { %471 = shalt.err (!%p468_p2)
}
   0x9   :  { %s472_s24 = scalar_lea.vmem %s20_s16, 2048  ;;  %p477_p4 = scmp.lt.s32.totalorder %s20_s16, %s20_s16 }
   0xa   :  { %p473_p3 = scmp.ne.s32.totalorder %s20_s16, %s472_s24  ;;  %p478_p5 = scmp.lt.s32.totalorder %s472_s24, %s472_s24 }
   0xc   :  { %p479_p6 = por %p478_p5, %p477_p4 }
   0xe   :  { %p480_p7 = pnand %p479_p6, %p473_p3 }
  0x10   :  { %483 = shalt.err (!%p480_p7)
}
  0x11   :  { %s535_s25 = smov 128   ;;  %s536_s26 = smov 8  }
  0x12   :  { %25 = dma.hbm_to_vmem [thread:$0]  %s621_s1, 2048, %s20_s16, [#allocation4], %s535_s25, %s535_s25, %s536_s26  }
  0x13   :  { %s537_s29 = smov [#allocation6]   ;;  %s484_s7 = scalar_lea.hbm %s622_s2, 2048 }
  0x14   :  { %s31_s30 = sshll.u32 %s537_s29, 4  ;;  %p485_p8 = scmp.ne.s32.totalorder %s622_s2, %s484_s7  ;;  %s32_s30 = int_to_ptr.vmem [resolvable:$true] %s31_s30 }
  0x15   :  { %p488_p9 = scmp.lt.u32.totalorder %s484_s7, %s622_s2 }
  0x17   :  { %p490_p10 = pnand %p488_p9, %p485_p8 }
  0x19   :  { %493 = shalt.err (!%p490_p10)
}
  0x1a   :  { %s494_s12 = scalar_lea.vmem %s32_s30, 2048  ;;  %p499_p12 = scmp.lt.s32.totalorder %s32_s30, %s32_s30 }
  0x1b   :  { %p495_p11 = scmp.ne.s32.totalorder %s32_s30, %s494_s12  ;;  %p500_p13 = scmp.lt.s32.totalorder %s494_s12, %s494_s12 }
  0x1d   :  { %p501_p0 = por %p500_p13, %p499_p12 }
  0x1f   :  { %p502_p1 = pnand %p501_p0, %p495_p11 }
  0x21   :  { %505 = shalt.err (!%p502_p1)
}
  0x22   :  { %37 = dma.hbm_to_vmem [thread:$0]  %s622_s2, 2048, %s32_s30, [#allocation7], %s535_s25, %s535_s25, %s536_s26  }
  0x23   :  { %528 = dma.done.wait [#allocation4], 2048  }
  0x24   :  { %529 = vsyncadd [#allocation4], 4294965248 }
  0x25   :  { %530 = dma.done.wait [#allocation7], 2048  }
  0x26   :  { %531 = vsyncadd [#allocation7], 4294965248  ;;  %v538_v0 = vmov 0   ;;  %v50_v1 = vld [vmem:[%s620_s0] sm:$0xff]  ;;  %v66_v2 = vld [vmem:[#allocation3] sm:$0xff]  ;;  %v52_v51 = vlaneseq  ;;  %v539_v54 = vmov 1.0  }
  0x27   :  { %461 = vset.pattern.permute.xlu0 %v538_v0  ;;  %v67_v3 = vld [vmem:[#allocation3 + $0x8] sm:$0xff]  ;;  %v68_v4 = vld [vmem:[#allocation3 + $0x10] sm:$0xff]  ;;  %v69_v5 = vld [vmem:[#allocation3 + $0x18] sm:$0xff]  ;;  %s540_s18 = smov [#allocation8]  }
  0x28   :  { %55 = vperm.xlu0 %461, %v50_v1   ;;  %v51_v6 = vld [vmem:[%s620_s0 + $0x8] sm:$0xff]  ;;  %v390_v7 = vpack.c.bf16 %v67_v3, %v66_v2  ;;  %v394_v8 = vpack.c.bf16 %v69_v5, %v68_v4  ;;  %v70_v9 = vld [vmem:[#allocation3 + $0x20] sm:$0xff]  ;;  %v71_v10 = vld [vmem:[#allocation3 + $0x28] sm:$0xff]  ;;  %v53_v52 = vand.u32 127, %v52_v51  ;;  %s266_s19 = sshll.u32 %s540_s18, 4  ;;  %s267_s19 = int_to_ptr.vmem [resolvable:$true] %s266_s19 }
  0x29   :  { %v398_v11 = vpack.c.bf16 %v71_v10, %v70_v9  ;;  %v161_v12 = vld [vmem:[#allocation6] sm:$0xff]  ;;  %v162_v13 = vld [vmem:[#allocation6 + $0x8] sm:$0xff]  ;;  %v163_v14 = vld [vmem:[#allocation6 + $0x10] sm:$0xff]  ;;  %s506_s20 = scalar_lea.vmem %s267_s19, 256  ;;  %p511_p3 = scmp.lt.s32.totalorder %s267_s19, %s267_s19 }
  0x2a   :  { %391 = vmatprep.subr.bf16.mxu0 %v390_v7  ;;  %v72_v15 = vld [vmem:[#allocation3 + $0x30] sm:$0xff]  ;;  %v73_v16 = vld [vmem:[#allocation3 + $0x38] sm:$0xff]  ;;  %v422_v17 = vpack.c.bf16 %v162_v13, %v161_v12  ;;  %v165_v20 = vld [vmem:[#allocation6 + $0x20] sm:$0xff]  ;;  %p507_p2 = scmp.ne.s32.totalorder %s267_s19, %s506_s20  ;;  %p512_p4 = scmp.lt.s32.totalorder %s506_s20, %s506_s20 }
  0x2b   :  { %393 = vmatpush3.bf16.msra.mxu0 %v390_v7  ;;  %v164_v18 = vld [vmem:[#allocation6 + $0x18] sm:$0xff]  ;;  %v166_v21 = vld [vmem:[#allocation6 + $0x28] sm:$0xff]  ;;  %v402_v22 = vpack.c.bf16 %v73_v16, %v72_v15  ;;  %v74_v23 = vld [vmem:[#allocation3 + $0x40] sm:$0xff] }
  0x2c   :  { %58 = vperm.xlu0 %461, %v51_v6   ;;  %395 = vmatprep.subr.bf16.mxu0 %v394_v8  ;;  %v426_v19 = vpack.c.bf16 %v164_v18, %v163_v14  ;;  %v75_v24 = vld [vmem:[#allocation3 + $0x48] sm:$0xff]  ;;  %v430_v25 = vpack.c.bf16 %v166_v21, %v165_v20  ;;  %v167_v26 = vld [vmem:[#allocation6 + $0x30] sm:$0xff]  ;;  %v168_v27 = vld [vmem:[#allocation6 + $0x38] sm:$0xff]  ;;  %p513_p5 = por %p512_p4, %p511_p3 }
  0x2d   :  { %423 = vmatprep.subr.bf16.mxu1 %v422_v17  ;;  %v406_v28 = vpack.c.bf16 %v75_v24, %v74_v23  ;;  %v76_v29 = vld [vmem:[#allocation3 + $0x50] sm:$0xff]  ;;  %v77_v30 = vld [vmem:[#allocation3 + $0x58] sm:$0xff]  ;;  %v434_v31 = vpack.c.bf16 %v168_v27, %v167_v26  ;;  %v169_v32 = vld [vmem:[#allocation6 + $0x40] sm:$0xff] }
  0x2e   :  { %425 = vmatpush3.bf16.msra.mxu1 %v422_v17  ;;  %v170_v33 = vld [vmem:[#allocation6 + $0x48] sm:$0xff]  ;;  %v410_v34 = vpack.c.bf16 %v77_v30, %v76_v29  ;;  %v78_v35 = vld [vmem:[#allocation3 + $0x60] sm:$0xff]  ;;  %v171_v38 = vld [vmem:[#allocation6 + $0x50] sm:$0xff]  ;;  %p514_p6 = pnand %p513_p5, %p507_p2 }
  0x2f   :  { %397 = vmatpush3.bf16.msra.mxu0 %v394_v8  ;;  %427 = vmatprep.subr.bf16.mxu1 %v426_v19  ;;  %v79_v36 = vld [vmem:[#allocation3 + $0x68] sm:$0xff]  ;;  %v438_v37 = vpack.c.bf16 %v170_v33, %v169_v32  ;;  %v172_v39 = vld [vmem:[#allocation6 + $0x58] sm:$0xff]  ;;  %v80_v41 = vld [vmem:[#allocation3 + $0x70] sm:$0xff] }
  0x30   :  { %399 = vmatprep.subr.bf16.mxu0 %v398_v11  ;;  %v414_v40 = vpack.c.bf16 %v79_v36, %v78_v35  ;;  %v81_v42 = vld [vmem:[#allocation3 + $0x78] sm:$0xff]  ;;  %v442_v43 = vpack.c.bf16 %v172_v39, %v171_v38  ;;  %v173_v44 = vld [vmem:[#allocation6 + $0x60] sm:$0xff]  ;;  %v174_v45 = vld [vmem:[#allocation6 + $0x68] sm:$0xff] }
  0x31   :  { %v418_v46 = vpack.c.bf16 %v81_v42, %v80_v41  ;;  %v446_v47 = vpack.c.bf16 %v174_v45, %v173_v44  ;;  %v175_v48 = vld [vmem:[#allocation6 + $0x70] sm:$0xff]  ;;  %v176_v49 = vld [vmem:[#allocation6 + $0x78] sm:$0xff]  ;;  %v283_v58 = vld [vmem:[%s623_s3] ss:$0 sm:$0xff] }
  0x32   :  { %429 = vmatpush3.bf16.msra.mxu1 %v426_v19  ;;  %v450_v50 = vpack.c.bf16 %v176_v49, %v175_v48 }
  0x33   :  { %401 = vmatpush3.bf16.msra.mxu0 %v398_v11  ;;  %431 = vmatprep.subr.bf16.mxu1 %v430_v25 }
  0x34   :  { %403 = vmatprep.subr.bf16.mxu0 %v402_v22 }
  0x36   :  { %433 = vmatpush3.bf16.msra.mxu1 %v430_v25 }
  0x37   :  { %405 = vmatpush3.bf16.msra.mxu0 %v402_v22  ;;  %435 = vmatprep.subr.bf16.mxu1 %v434_v31 }
  0x38   :  { %407 = vmatprep.subr.bf16.mxu0 %v406_v28 }
  0x3a   :  { %437 = vmatpush3.bf16.msra.mxu1 %v434_v31 }
  0x3b   :  { %409 = vmatpush3.bf16.msra.mxu0 %v406_v28  ;;  %439 = vmatprep.subr.bf16.mxu1 %v438_v37 }
  0x3c   :  { %411 = vmatprep.subr.bf16.mxu0 %v410_v34 }
  0x3e   :  { %441 = vmatpush3.bf16.msra.mxu1 %v438_v37 }
  0x3f   :  { %413 = vmatpush3.bf16.msra.mxu0 %v410_v34  ;;  %443 = vmatprep.subr.bf16.mxu1 %v442_v43 }
  0x40   :  { %415 = vmatprep.subr.bf16.mxu0 %v414_v40 }
  0x42   :  { %445 = vmatpush3.bf16.msra.mxu1 %v442_v43 }
  0x43   :  { %417 = vmatpush3.bf16.msra.mxu0 %v414_v40  ;;  %447 = vmatprep.subr.bf16.mxu1 %v446_v47 }
  0x44   :  { %419 = vmatprep.subr.bf16.mxu0 %v418_v46 }
  0x46   :  { %449 = vmatpush3.bf16.msra.mxu1 %v446_v47 }
  0x47   :  { %421 = vmatpush3.bf16.msra.mxu0 %v418_v46  ;;  %451 = vmatprep.subr.bf16.mxu1 %v450_v50 }
  0x4a   :  { %453 = vmatpush3.bf16.msra.mxu1 %v450_v50 }
  0xa7   :  { %v56_v53 = vpop.permute.xlu0 %55 }
  0xa8   :  { %vm60_vm0 = vcmp.eq.s32.totalorder %v53_v52, %v56_v53 }
  0xa9   :  { %352 = vmatprep.mubr.msk.f32.mxu0 %vm60_vm0, %v539_v54 }
  0xab   :  { %v59_v55 = vpop.permute.xlu0 %58 }
  0xac   :  { %vm61_vm1 = vcmp.eq.s32.totalorder %v53_v52, %v59_v55 }
  0xad   :  { %353 = vmatmul.mubr.msk.f32.vlgmr.msra.gmra.mrb[0].mxu0 %vm61_vm1, %v539_v54 }
 0x180   :  { %v354_v56 = vpop.f32.mrb[0].mxu0 }
 0x181   :  { %v148_v57 = vpop.f32.mrb[1].mxu0 }
 0x182   :  { %387 = vmatprep.mubr.f32.mxu1 %v148_v57 }
 0x183   :  { %388 = vmatmul.mubr.f32.vlgmr.msra.gmra.mrb[0].mxu1 %v354_v56 }
 0x256   :  { %v389_v59 = vpop.f32.mrb[0].mxu1 }
 0x257   :  { %v256_v60 = vadd.f32 %v389_v59, %v283_v58  ;;  %v250_v61 = vpop.f32.mrb[1].mxu1 }
 0x258   :  { %v251_v62 = vadd.f32 %v283_v58, %v250_v61 }
 0x259   :  { %260 = vst [vmem:[#allocation8 + $0x8] sm:$0xff] %v256_v60 }
 0x25a   :  { %259 = vst [vmem:[#allocation8] sm:$0xff] %v251_v62 }
 0x25b   :  { %517 = shalt.err (!%p514_p6)
}
 0x25c   :  { %s518_s3 = scalar_lea.hbm %s624_s4, 256 }
 0x25d   :  { %p519_p7 = scmp.ne.s32.totalorder %s624_s4, %s518_s3  ;;  %p522_p8 = scmp.lt.u32.totalorder %s518_s3, %s624_s4 }
 0x25f   :  { %p524_p9 = pnand %p522_p8, %p519_p7 }
 0x261   :  { %527 = shalt.err (!%p524_p9)
}
 0x262   :  { %272 = dma.vmem_to_hbm [thread:$0]  %s267_s19, 256, %s624_s4, [#allocation5], %s535_s25, %s535_s25, %s536_s26  }
 0x263   :  { %532 = dma.done.wait [#allocation5], 256  }
 0x264   :  { %533 = vsyncadd [#allocation5], 4294967040 }
 0x265   :  { %276 = vsyncpa [#allocation4], 1 }
 0x266   :  { %277 = vsyncpa [#allocation7], 1 }
 0x267   :  { %278 = vsyncpa [#allocation5], 1 }

</bundles_post_ra>
